<compile_context>
chip_gen: v5e
topology: v5e:2x2
jax: 0.10.0
libtpu: 0.0.40
codegen_flags: <defaults>
</compile_context>

<pallas_src>
import jax
import jax.numpy as jnp
from jax.experimental import pallas as pl
from jax.experimental.pallas import tpu as pltpu


def _round_up(n, m):
    return ((n + m - 1) // m) * m


# ----------------------------- Pallas kernel -------------------------------
def critic_kernel(x_ref, w1_ref, b1_ref, w2_ref, rows_ref, bout_ref,
                  o_ref, h1_scr, acc_scr):
    j = pl.program_id(0)
    tile_n = w2_ref.shape[1]

    @pl.when(j == 0)
    def _init():
        acc_scr[...] = jnp.zeros_like(acc_scr)
        # first_layer + ReLU, computed once; kept resident as bf16 MXU operand.
        h1 = jnp.dot(x_ref[...], w1_ref[...],
                     preferred_element_type=jnp.float32) + b1_ref[...]
        h1_scr[...] = jnp.maximum(h1, 0.0).astype(h1_scr.dtype)

    # Resident packed rows: [b2, w_out, wa+wa_sym, wb, 1/c, 0, 0, 0].
    # col0 is tile_n-aligned (tile_n is a multiple of 128) -> aligned loads.
    col0 = pl.multiple_of(j * tile_n, 128)
    rows = rows_ref[:, pl.ds(col0, tile_n)]          # (8, tile_n) fp32
    b2, wout, wa, wb, winvc = (rows[0:1], rows[1:2], rows[2:3],
                               rows[3:4], rows[4:5])

    # sec_layer tile: (B, H0) @ (H0, tile_n), bf16 operands, fp32 accumulation.
    h2 = jnp.dot(h1_scr[...], w2_ref[...],
                 preferred_element_type=jnp.float32) + b2
    h2 = jnp.maximum(h2, 0.0)

    # out_layer partial: VPU multiply + lane reduction (avoids an N=1 MXU push).
    p1 = jnp.sum(h2 * wout, axis=-1, keepdims=True)

    # EncodeSym partial: g @ a + g @ a_sym == g @ (a + a_sym) (folded at prepack).
    # Padded H1 columns: w2/b2 -> h2 = 0, winvc = 0 -> g = 1, wa = wout = 0, so
    # they contribute exactly nothing to either reduction. Keep that invariant.
    g = jnp.exp(-jnp.square((h2 - wb) * winvc))
    p2 = jnp.sum(g * wa, axis=-1, keepdims=True)

    acc_scr[...] += p1 + p2

    @pl.when(j == pl.num_programs(0) - 1)
    def _finalize():
        res = acc_scr[...] + bout_ref[...]
        # lane-dense store; column 0 holds the result, sliced outside.
        o_ref[...] = jnp.broadcast_to(res, o_ref.shape)


# ----------------------------- prepacking (one-time) ------------------------
def prepack_critic_params(params, *, tile_n=2048):
    """One-time weight repack. Hoisted out of the per-call hot path: the
    fp32 pad + bf16 cast of w2 alone costs ~3x the kernel's HBM traffic if
    done per call."""
    w1 = params["w1"].astype(jnp.float32)              # (d_in, H0)
    b1 = params["b1"].astype(jnp.float32).reshape(1, -1)
    H0 = w1.shape[1]

    w2 = params["w2"]
    H1 = w2.shape[1]
    assert tile_n % 128 == 0

    # Keep the double-buffered bf16 w2 stream <= 16 MiB (v7x scoped-VMEM headroom).
    vmem_cap = 16 * 1024 * 1024
    max_tile = max(128, (vmem_cap // (2 * H0 * 2)) // 128 * 128)
    tile_n = min(tile_n, max_tile, _round_up(H1, 128))
    H1p = _round_up(H1, tile_n)
    pad_n = H1p - H1

    # Dominant weight stream in bf16 (halves HBM bytes); padded columns are zero.
    w2_bf16 = jnp.pad(w2.astype(jnp.float32),
                      ((0, 0), (0, pad_n))).astype(jnp.bfloat16)

    def row(v):
        return jnp.pad(jnp.asarray(v, jnp.float32).reshape(1, -1),
                       ((0, 0), (0, pad_n)))

    c = params["weight_c"].astype(jnp.float32).reshape(1, -1)
    # Sign-preserving floor: identical to 1/c for any realistic weight_c, but
    # avoids 0 * inf -> NaN if |weight_c| ever underflows to zero.
    winv_c = jnp.sign(c) / jnp.maximum(jnp.abs(c), jnp.float32(1e-30))

    rows = jnp.concatenate([
        row(params["b2"]),                                         # row 0: b2
        row(params["w_out"]),                                      # row 1: w_out
        row(params["weight_a"] + params["weight_a_sym"]),          # row 2: a + a_sym
        row(params["weight_b"]),                                   # row 3: b
        row(winv_c),                                               # row 4: 1/c
        jnp.zeros((3, H1p), jnp.float32),                          # pad to 8 sublanes
    ], axis=0)

    b_out = params["b_out"].astype(jnp.float32).reshape(1, 1)

    return dict(w1=w1, b1=b1, w2_bf16=w2_bf16, rows=rows, b_out=b_out,
                tile_n=int(tile_n), H1p=int(H1p))


# ----------------------------- per-call wrapper ------------------------------
def critic_forward(state, action, packed):
    # glue: concatenation (matches torch.cat([state, action], dim=-1))
    x = jnp.concatenate([state, action], axis=-1).astype(jnp.float32)
    B, d_in = x.shape
    B_pad = _round_up(max(B, 8), 8)                  # sublane-aligned batch
    if B_pad != B:
        x = jnp.pad(x, ((0, B_pad - B), (0, 0)))

    w1, b1 = packed["w1"], packed["b1"]
    H0 = w1.shape[1]
    tile_n, H1p = packed["tile_n"], packed["H1p"]
    num_tiles = H1p // tile_n

    resident = lambda j: (0, 0)     # small operands stay in VMEM across the grid
    col_tile = lambda j: (0, j)     # streamed w2 tiles (auto double-buffered)

    grid_spec = pltpu.PrefetchScalarGridSpec(
        num_scalar_prefetch=0,
        grid=(num_tiles,),
        in_specs=[
            pl.BlockSpec((B_pad, d_in), resident),   # x
            pl.BlockSpec((d_in, H0), resident),      # w1
            pl.BlockSpec((1, H0), resident),         # b1
            pl.BlockSpec((H0, tile_n), col_tile),    # w2 (bf16, pipelined stream)
            pl.BlockSpec((8, H1p), resident),        # packed per-column rows
            pl.BlockSpec((1, 1), resident),          # b_out
        ],
        out_specs=pl.BlockSpec((B_pad, 128), resident),
        scratch_shapes=[
            pltpu.VMEM((B_pad, H0), jnp.bfloat16),   # resident h1 (MXU operand)
            pltpu.VMEM((B_pad, 1), jnp.float32),     # x1 + x2 accumulator
        ],
    )

    out = pl.pallas_call(
        critic_kernel,
        out_shape=jax.ShapeDtypeStruct((B_pad, 128), jnp.float32),
        grid_spec=grid_spec,
        # H1 is a reduction axis -> "arbitrary". Per-step VMEM: 2 x bf16
        # (H0, tile_n) buffers (<= 16 MiB) + ~256 KB resident rows + tiny h1/acc.
        compiler_params=pltpu.CompilerParams(
            dimension_semantics=("arbitrary",),
        ),
    )(x, w1, b1, packed["w2_bf16"], packed["rows"], packed["b_out"])

    # final .reshape(-1, 1) of the torch module (drop batch/lane padding)
    return out[:B, :1]


# ----------------------------- parameter init --------------------------------
def xavier_uniform(key, fan_in, fan_out):
    bound = jnp.sqrt(6.0 / (fan_in + fan_out))
    # stored as (in, out): y = x @ W
    return jax.random.uniform(key, (fan_in, fan_out), jnp.float32, -bound, bound)


def init_critic_params(key, state_dim, action_dim, hidden_dim):
    h0, h1 = hidden_dim
    d_in = state_dim + action_dim
    keys = jax.random.split(key, 6)

    # Linear layers: xavier_uniform weights, zero bias (weights_init_)
    w1 = xavier_uniform(keys[0], d_in, h0)
    b1 = jnp.zeros((1, h0), jnp.float32)
    w2 = xavier_uniform(keys[1], h0, h1)
    b2 = jnp.zeros((1, h1), jnp.float32)
    w_out = xavier_uniform(keys[2], h1, 1)
    b_out = jnp.zeros((1, 1), jnp.float32)

    # EncodeSym(input_dim=h1, out_dim=1, a_cof=0.1, b_cof=1.0, c_cof=0.1)
    a_cof, b_cof, c_cof = 0.1, 1.0, 0.1
    weight_a = a_cof * jax.random.normal(keys[3], (h1, 1), jnp.float32)
    weight_a_sym = -weight_a
    weight_b = b_cof * (jax.random.uniform(keys[4], (1, h1), jnp.float32) - 0.5)
    weight_c = c_cof * jax.random.normal(keys[5], (1, h1), jnp.float32)

    return dict(
        w1=w1, b1=b1, w2=w2, b2=b2, w_out=w_out, b_out=b_out,
        weight_a=weight_a, weight_a_sym=weight_a_sym,
        weight_b=weight_b, weight_c=weight_c,
    )


# ----------------------------- main ------------------------------------------
if __name__ == "__main__":
    B = 4
    state_dim, action_dim = 12, 4
    hidden_dim = [128, 512]   # small stand-in for the default [1024, 8096]

    key = jax.random.PRNGKey(0)
    k_param, k_state, k_action = jax.random.split(key, 3)

    params = init_critic_params(k_param, state_dim, action_dim, hidden_dim)
    state = jax.random.normal(k_state, (B, state_dim), jnp.float32)
    action = jax.random.normal(k_action, (B, action_dim), jnp.float32)

    # tile_n=128 -> 4 grid steps over H1 (exercises the streaming/accumulate path)
    packed = prepack_critic_params(params, tile_n=128)
    out = critic_forward(state, action, packed)
    out = jax.block_until_ready(out)

    # pure-JAX fp32 reference (faithful to the PyTorch module)
    x = jnp.concatenate([state, action], axis=-1)
    h1 = jnp.maximum(x @ params["w1"] + params["b1"], 0.0)
    h2 = jnp.maximum(h1 @ params["w2"] + params["b2"], 0.0)
    x1 = h2 @ params["w_out"] + params["b_out"]
    g = jnp.exp(-jnp.square((h2 - params["weight_b"]) / params["weight_c"]))
    x2 = g @ params["weight_a"] + g @ params["weight_a_sym"]
    ref = (x1 + x2).reshape(-1, 1)

    assert out.shape == (B, 1)
    # bf16 weight stream => slightly looser tolerance than pure fp32
    assert jnp.allclose(out, ref, atol=1e-2, rtol=1e-2), (out, ref)
    print("KERNEL_OK")
</pallas_src>

<mosaic_0001>
module attributes {stable_mosaic.version = 11 : i64} {
  func.func @critic_kernel(%arg0: i32, %arg1: memref<8x16xf32, #tpu.memory_space<vmem>>, %arg2: memref<16x128xf32, #tpu.memory_space<vmem>>, %arg3: memref<1x128xf32, #tpu.memory_space<vmem>>, %arg4: memref<128x128xbf16, #tpu.memory_space<vmem>>, %arg5: memref<8x512xf32, #tpu.memory_space<vmem>>, %arg6: memref<1x1xf32, #tpu.memory_space<vmem>>, %arg7: memref<8x128xf32, #tpu.memory_space<vmem>>, %arg8: memref<8x128xbf16, #tpu.memory_space<vmem>>, %arg9: memref<8x1xf32, #tpu.memory_space<vmem>>) attributes {dimension_semantics = [#tpu.dimension_semantics<arbitrary>], iteration_bounds = array<i64: 4>, scalar_prefetch = 0 : i64, scratch_operands = 2 : i64, tpu.core_type = #tpu.core_type<tc>, window_params = [{pipeline_mode = #tpu.pipeline_mode<synchronous>, transform_indices = @transform_0, window_bounds = array<i64: 8, 16>}, {pipeline_mode = #tpu.pipeline_mode<synchronous>, transform_indices = @transform_1, window_bounds = array<i64: 16, 128>}, {pipeline_mode = #tpu.pipeline_mode<synchronous>, transform_indices = @transform_2, window_bounds = array<i64: 1, 128>}, {transform_indices = @transform_3, window_bounds = array<i64: 128, 128>}, {pipeline_mode = #tpu.pipeline_mode<synchronous>, transform_indices = @transform_4, window_bounds = array<i64: 8, 512>}, {pipeline_mode = #tpu.pipeline_mode<synchronous>, transform_indices = @transform_5, window_bounds = array<i64: 1, 1>}, {pipeline_mode = #tpu.pipeline_mode<synchronous>, transform_indices = @transform_6, window_bounds = array<i64: 8, 128>}]} {
    %c0_i32 = arith.constant 0 : i32
    %0 = arith.cmpi eq, %arg0, %c0_i32 : i32
    %1 = arith.extui %0 : i1 to i32
    %c0_i32_0 = arith.constant 0 : i32
    %2 = arith.cmpi ne, %1, %c0_i32_0 : i32
    scf.if %2 {
      %cst_14 = arith.constant 0.000000e+00 : f32
      %42 = vector.broadcast %cst_14 : f32 to vector<8x1xf32>
      %c0_15 = arith.constant 0 : index
      %c0_16 = arith.constant 0 : index
      %43 = vector.load %arg9[%c0_15, %c0_16] : memref<8x1xf32, #tpu.memory_space<vmem>>, vector<8x1xf32>
      tpu.vector_store %arg9[%c0_15, %c0_16], %42 {strides = array<i32>} : memref<8x1xf32, #tpu.memory_space<vmem>>, vector<8x1xf32>,
      %c0_17 = arith.constant 0 : index
      %c0_18 = arith.constant 0 : index
      %44 = vector.load %arg1[%c0_17, %c0_18] : memref<8x16xf32, #tpu.memory_space<vmem>>, vector<8x16xf32>
      %c0_19 = arith.constant 0 : index
      %c0_20 = arith.constant 0 : index
      %45 = vector.load %arg2[%c0_19, %c0_20] : memref<16x128xf32, #tpu.memory_space<vmem>>, vector<16x128xf32>
      %cst_21 = arith.constant dense<0.000000e+00> : vector<8x128xf32>
      %46 = tpu.matmul %44, %45, %cst_21 {dimension_numbers = #tpu.dot_dimension_numbers<[1], [0], [0], [1], [0, 0, 1, 1], [], []>} : vector<8x16xf32>, vector<16x128xf32>, vector<8x128xf32> -> vector<8x128xf32>
      %c0_22 = arith.constant 0 : index
      %c0_23 = arith.constant 0 : index
      %47 = vector.load %arg3[%c0_22, %c0_23] : memref<1x128xf32, #tpu.memory_space<vmem>>, vector<1x128xf32>
      %48 = vector.broadcast %47 : vector<1x128xf32> to vector<8x128xf32>
      %49 = arith.addf %46, %48 : vector<8x128xf32>
      %cst_24 = arith.constant 0.000000e+00 : f32
      %50 = vector.broadcast %cst_24 : f32 to vector<8x128xf32>
      %51 = arith.maximumf %49, %50 : vector<8x128xf32>
      %52 = arith.truncf %51 : vector<8x128xf32> to vector<8x128xbf16>
      %c0_25 = arith.constant 0 : index
      %c0_26 = arith.constant 0 : index
      %53 = vector.load %arg8[%c0_25, %c0_26] : memref<8x128xbf16, #tpu.memory_space<vmem>>, vector<8x128xbf16>
      tpu.vector_store %arg8[%c0_25, %c0_26], %52 {strides = array<i32>} : memref<8x128xbf16, #tpu.memory_space<vmem>>, vector<8x128xbf16>,
    } else {
    }
    %c128_i32 = arith.constant 128 : i32
    %3 = arith.muli %arg0, %c128_i32 : i32
    %4 = tpu.assume_multiple %3, 128 : i32
    %c0 = arith.constant 0 : index
    %5 = arith.index_cast %4 : i32 to index
    %6 = vector.load %arg5[%c0, %5] : memref<8x512xf32, #tpu.memory_space<vmem>>, vector<8x128xf32>
    %7 = vector.extract_strided_slice %6 {offsets = [0, 0], sizes = [1, 128], strides = [1, 1]} : vector<8x128xf32> to vector<1x128xf32>
    %8 = vector.extract_strided_slice %6 {offsets = [1, 0], sizes = [1, 128], strides = [1, 1]} : vector<8x128xf32> to vector<1x128xf32>
    %9 = vector.extract_strided_slice %6 {offsets = [2, 0], sizes = [1, 128], strides = [1, 1]} : vector<8x128xf32> to vector<1x128xf32>
    %10 = vector.extract_strided_slice %6 {offsets = [3, 0], sizes = [1, 128], strides = [1, 1]} : vector<8x128xf32> to vector<1x128xf32>
    %11 = vector.extract_strided_slice %6 {offsets = [4, 0], sizes = [1, 128], strides = [1, 1]} : vector<8x128xf32> to vector<1x128xf32>
    %c0_1 = arith.constant 0 : index
    %c0_2 = arith.constant 0 : index
    %12 = vector.load %arg8[%c0_1, %c0_2] : memref<8x128xbf16, #tpu.memory_space<vmem>>, vector<8x128xbf16>
    %c0_3 = arith.constant 0 : index
    %c0_4 = arith.constant 0 : index
    %13 = vector.load %arg4[%c0_3, %c0_4] : memref<128x128xbf16, #tpu.memory_space<vmem>>, vector<128x128xbf16>
    %cst = arith.constant dense<0.000000e+00> : vector<8x128xf32>
    %14 = tpu.matmul %12, %13, %cst {dimension_numbers = #tpu.dot_dimension_numbers<[1], [0], [0], [1], [0, 0, 1, 1], [], []>} : vector<8x128xbf16>, vector<128x128xbf16>, vector<8x128xf32> -> vector<8x128xf32>
    %15 = vector.broadcast %7 : vector<1x128xf32> to vector<8x128xf32>
    %16 = arith.addf %14, %15 : vector<8x128xf32>
    %cst_5 = arith.constant 0.000000e+00 : f32
    %17 = vector.broadcast %cst_5 : f32 to vector<8x128xf32>
    %18 = arith.maximumf %16, %17 : vector<8x128xf32>
    %19 = vector.broadcast %8 : vector<1x128xf32> to vector<8x128xf32>
    %20 = arith.mulf %18, %19 : vector<8x128xf32>
    %cst_6 = arith.constant dense<0.000000e+00> : vector<8xf32>
    %21 = vector.multi_reduction <add>, %20, %cst_6 [1] : vector<8x128xf32> to vector<8xf32>
    %22 = vector.shape_cast %21 : vector<8xf32> to vector<8x1xf32>
    %23 = vector.broadcast %10 : vector<1x128xf32> to vector<8x128xf32>
    %24 = arith.subf %18, %23 : vector<8x128xf32>
    %25 = vector.broadcast %11 : vector<1x128xf32> to vector<8x128xf32>
    %26 = arith.mulf %24, %25 : vector<8x128xf32>
    %27 = arith.mulf %26, %26 : vector<8x128xf32>
    %cst_7 = arith.constant 0.000000e+00 : f32
    %28 = vector.broadcast %cst_7 : f32 to vector<8x128xf32>
    %29 = arith.subf %28, %27 : vector<8x128xf32>
    %30 = math.exp %29 : vector<8x128xf32>
    %31 = vector.broadcast %9 : vector<1x128xf32> to vector<8x128xf32>
    %32 = arith.mulf %30, %31 : vector<8x128xf32>
    %cst_8 = arith.constant dense<0.000000e+00> : vector<8xf32>
    %33 = vector.multi_reduction <add>, %32, %cst_8 [1] : vector<8x128xf32> to vector<8xf32>
    %34 = vector.shape_cast %33 : vector<8xf32> to vector<8x1xf32>
    %c0_9 = arith.constant 0 : index
    %c0_10 = arith.constant 0 : index
    %35 = vector.load %arg9[%c0_9, %c0_10] : memref<8x1xf32, #tpu.memory_space<vmem>>, vector<8x1xf32>
    %36 = arith.addf %22, %34 : vector<8x1xf32>
    %37 = arith.addf %35, %36 : vector<8x1xf32>
    %c0_11 = arith.constant 0 : index
    %c0_12 = arith.constant 0 : index
    %38 = vector.load %arg9[%c0_11, %c0_12] : memref<8x1xf32, #tpu.memory_space<vmem>>, vector<8x1xf32>
    tpu.vector_store %arg9[%c0_11, %c0_12], %37 {strides = array<i32>} : memref<8x1xf32, #tpu.memory_space<vmem>>, vector<8x1xf32>,
    %c3_i32 = arith.constant 3 : i32
    %39 = arith.cmpi eq, %arg0, %c3_i32 : i32
    %40 = arith.extui %39 : i1 to i32
    %c0_i32_13 = arith.constant 0 : i32
    %41 = arith.cmpi ne, %40, %c0_i32_13 : i32
    scf.if %41 {
      %c0_14 = arith.constant 0 : index
      %c0_15 = arith.constant 0 : index
      %42 = vector.load %arg9[%c0_14, %c0_15] : memref<8x1xf32, #tpu.memory_space<vmem>>, vector<8x1xf32>
      %c0_16 = arith.constant 0 : index
      %c0_17 = arith.constant 0 : index
      %43 = vector.load %arg6[%c0_16, %c0_17] : memref<1x1xf32, #tpu.memory_space<vmem>>, vector<1x1xf32>
      %44 = vector.broadcast %43 : vector<1x1xf32> to vector<8x1xf32>
      %45 = arith.addf %42, %44 : vector<8x1xf32>
      %46 = vector.shape_cast %45 : vector<8x1xf32> to vector<8x1xf32>
      %47 = vector.broadcast %46 : vector<8x1xf32> to vector<8x128xf32>
      %c0_18 = arith.constant 0 : index
      %c0_19 = arith.constant 0 : index
      %48 = vector.load %arg7[%c0_18, %c0_19] : memref<8x128xf32, #tpu.memory_space<vmem>>, vector<8x128xf32>
      tpu.vector_store %arg7[%c0_18, %c0_19], %47 {strides = array<i32>} : memref<8x128xf32, #tpu.memory_space<vmem>>, vector<8x128xf32>,
    } else {
    }
    return
  }
  func.func @transform_0(%arg0: i32) -> (i32, i32) {
    %c0_i32 = arith.constant 0 : i32
    %c0_i32_0 = arith.constant 0 : i32
    %c0_i32_1 = arith.constant 0 : i32
    return %c0_i32, %c0_i32_0 : i32, i32
  }
  func.func @transform_1(%arg0: i32) -> (i32, i32) {
    %c0_i32 = arith.constant 0 : i32
    %c0_i32_0 = arith.constant 0 : i32
    %c0_i32_1 = arith.constant 0 : i32
    return %c0_i32, %c0_i32_0 : i32, i32
  }
  func.func @transform_2(%arg0: i32) -> (i32, i32) {
    %c0_i32 = arith.constant 0 : i32
    %c0_i32_0 = arith.constant 0 : i32
    %c0_i32_1 = arith.constant 0 : i32
    return %c0_i32, %c0_i32_0 : i32, i32
  }
  func.func @transform_3(%arg0: i32) -> (i32, i32) {
    %c0_i32 = arith.constant 0 : i32
    %c0_i32_0 = arith.constant 0 : i32
    return %c0_i32, %arg0 : i32, i32
  }
  func.func @transform_4(%arg0: i32) -> (i32, i32) {
    %c0_i32 = arith.constant 0 : i32
    %c0_i32_0 = arith.constant 0 : i32
    %c0_i32_1 = arith.constant 0 : i32
    return %c0_i32, %c0_i32_0 : i32, i32
  }
  func.func @transform_5(%arg0: i32) -> (i32, i32) {
    %c0_i32 = arith.constant 0 : i32
    %c0_i32_0 = arith.constant 0 : i32
    %c0_i32_1 = arith.constant 0 : i32
    return %c0_i32, %c0_i32_0 : i32, i32
  }
  func.func @transform_6(%arg0: i32) -> (i32, i32) {
    %c0_i32 = arith.constant 0 : i32
    %c0_i32_0 = arith.constant 0 : i32
    %c0_i32_1 = arith.constant 0 : i32
    return %c0_i32, %c0_i32_0 : i32, i32
  }
}

</mosaic_0001>

<bundles_post_ra>
// kernel: tpu_custom_call.1
= control target key start
LH: loop header
LB: loop body
LE: loop exit
PB: predicated region body
PF: predicated region fallthrough
CT: control target
= control target key end

     0   :  { %s1108_s0 = inlined_call_operand.hbm [shape: f32[8,16], index: 0, kind: input, shape index: {}]   ;;  %s1109_s1 = inlined_call_operand.hbm [shape: f32[16,128], index: 1, kind: input, shape index: {}]   ;;  %s1110_s2 = inlined_call_operand.vmem [shape: f32[1,128], index: 2, kind: input, shape index: {}]   ;;  %s1111_s3 = inlined_call_operand.hbm [shape: bf16[128,512], index: 3, kind: input, shape index: {}]   ;;  %s1112_s4 = inlined_call_operand.hbm [shape: f32[8,512], index: 4, kind: input, shape index: {}]   ;;  %s1113_s5 = inlined_call_operand.<no memory space> [shape: f32[1,1], index: 5, kind: input, shape index: {}]   ;;  %s1114_s6 = inlined_call_operand.hbm [shape: f32[8,128], index: 6, kind: output, shape index: {}]  }
   0x1   :  { %1115 = sst [smem:[#allocation18_spill]] %s1108_s0  ;;  %v11_v0 = vstv %s1113_s5 }
   0x2   :  { %12 = vst [vmem:[#allocation4] sm:$0x1] %v11_v0 }
   0x3   :  { %13 = vsyncpa [#allocation6], 0 }
   0x4   :  { %14 = vsyncpa [#allocation9], 0 }
   0x5   :  { %15 = vsyncpa [#allocation7], 0  ;;  %s956_s23 = smov 0   ;;  %s958_s24 = smov 0  }
   0x6   :  { %s960_s25 = smov 0   ;;  %s962_s26 = smov 0  }
   0x7 LB: > { %s975_s5 = sadd.s32 4294967295, %s905_s26   ;;  %s978_s27 = sadd.s32 1, %s905_s26   ;;  %s905_s26 = sphi %s962_s26, %s1125_s26   ;;  %s901_s25 = sphi %s960_s25, %s1124_s25   ;;  %s897_s24 = sphi %s958_s24, %s1123_s24   ;;  %s893_s23 = sphi %s956_s23, %s1122_s23  }
   0x8   : > { %s88_s28 = ssub.s32 %s905_s26, %s978_s27  ;;  %s91_s29 = sadd.s32 1, %s901_s25 }
   0x9   : > { %p89_p0 = scmp.eq.s32.totalorder %s88_s28, 0  ;;  %p98_p1 = scmp.ne.s32.totalorder %s901_s25, %s897_s24 }
   0xa   : > { %p99_p2 = scmp.eq.s32.totalorder %s905_s26, 0  ;;  %p104_p3 = scmp.ne.s32.totalorder %s897_s24, %s893_s23 }
   0xb   : > { %s988_s30 = scalar_select %p89_p0, %s901_s25, %s91_s29  }
   0xc   : > { %p990_p4 = por %p99_p2, %p98_p1  ;;  %p105_p5 = scmp.eq.s32.totalorder %s975_s5, 0 }
   0xd   : > { %p557_p6 = scmp.ge.s32.totalorder %s905_s26, 1  ;;  %p178_p7 = scmp.lt.s32.totalorder %s905_s26, 5 }
   0xe   : > { %p999_p8 = por %p105_p5, %p104_p3  ;;  %p558_p9 = scmp.ne.s32.totalorder %s975_s5, 0 }
   0xf   : > { %p1004_p10 = pnand %p557_p6, %p178_p7  ;;  %s1119_s0 = sld [smem:[#allocation18_spill]] }
  0x10   : > { %s907_s13 = smov [#allocation5]   ;;  %p653_p13 = scmp.lt.s32.totalorder %s905_s26, 4 }
  0x11   : > { %p636_p11 = pneg %p1004_p10  ;;  %s192_s14 = sshll.u32 %s907_s13, 4  ;;  %s193_s14 = int_to_ptr.vmem [resolvable:$true] %s192_s14 }
  0x12   : > { %s201_s18 = sshll.u32 %s1109_s1, 4  ;;  %p1025_p0 = pnand %p653_p13, %p990_p4  ;;  %s202_s18 = int_to_ptr.hbm [resolvable:$true] %s201_s18 }
  0x13   : > { %p1015_p12 = pnand %p636_p11, %p105_p5  ;;  %s908_s20 = smov [#allocation8]  }
  0x14   : > { %s203_s21 = sshll.u32 %s908_s20, 4  ;;  %s909_s22 = smov 128   ;;  %s204_s21 = int_to_ptr.vmem [resolvable:$true] %s203_s21 }
  0x15   : > { %s190_s12 = sshll.u32 %s1119_s0, 4  ;;  %s910_s23 = smov 8   ;;  %s191_s12 = int_to_ptr.hbm [resolvable:$true] %s190_s12 }
  0x16   : > { %639 = dma.hbm_to_vmem [thread:$0]  (!%p1015_p12), %s191_s12, 128, %s193_s14, [#allocation6]  }
  0x17   : > { %642 = dma.hbm_to_vmem [thread:$0]  (!%p1015_p12), %s202_s18, 256, %s204_s21, [#allocation9], %s909_s22, %s909_s22, %s910_s23  }
  0x18   : > { %s219_s7 = sshll.u32 %s1112_s4, 4  ;;  %s911_s10 = smov [#allocation11]   ;;  %s220_s7 = int_to_ptr.hbm [resolvable:$true] %s219_s7 }
  0x19   : > { %s221_s11 = sshll.u32 %s911_s10, 4  ;;  %s235_s13 = sand.u32 1, %s905_s26   ;;  %s222_s11 = int_to_ptr.vmem [resolvable:$true] %s221_s11 }
  0x1a   : > { %645 = dma.hbm_to_vmem [thread:$0]  (!%p1015_p12), %s220_s7, 512, %s222_s11, [#allocation9]  }
  0x1b   : > { %s237_s12 = sand.u32 1, %s901_s25   ;;  %s563_s16 = sshll.u32 %s905_s26, 2 }
  0x1c   : > { %s562_s14 = sshll.u32 %s237_s12, 6  ;;  %s243_s0 = scalar_lea.hbm %s1111_s3, %s563_s16 }
  0x1d   : > { %s244_s18 = sshll.u32 %s243_s0, 4  ;;  %s239_s21 = scalar_lea.vmem [#allocation10], %s562_s14  ;;  %s245_s18 = int_to_ptr.hbm [resolvable:$true] %s244_s18 }
  0x1e   : > { %s246_s22 = sshll.u32 %s239_s21, 4  ;;  %s236_s23 = scalar_lea.sflag [#allocation6], %s235_s13  ;;  %s247_s22 = int_to_ptr.vmem [resolvable:$true] %s246_s22 }
  0x1f   : > { %s797_s28 = sshra.s32 %s245_s18, 4  ;;  %p801_p2 = pneg %p1025_p0  ;;  %s798_s28 = int_to_ptr.hbm [resolvable:$true] %s797_s28 }
  0x20   : > { %s799_s29 = scalar_lea.hbm %s798_s28, 64  ;;  %s804_s7 = scalar_lea.hbm %s1111_s3, 256 }
  0x21   : > { %p800_p1 = scmp.ne.s32.totalorder %s798_s28, %s799_s29  ;;  %p805_p6 = scmp.lt.s32.totalorder %s798_s28, %s1111_s3 }
  0x22   : > { %p806_p7 = scmp.lt.s32.totalorder %s804_s7, %s799_s29 }
  0x23   : > { %p802_p3 = pnand %p801_p2, %p800_p1 }
  0x24   : > { %p807_p11 = por %p806_p7, %p805_p6 }
  0x25   : > { %p803_p4 = pneg %p802_p3 }
  0x27   : > { %p808_p12 = pnand %p807_p11, %p803_p4 }
  0x29   : > { %811 = shalt.err (!%p808_p12)
}
  0x2a   : > { %s912_s0 = smov 256   ;;  %s913_s13 = smov 64  }
  0x2b   : > { %s914_s12 = smov 4   ;;  %258 = sbr.rel (%p1004_p10) target bundleno = 631 (0x277), region = 44 }
  0x2c   : > { %649 = dma.hbm_to_vmem [thread:$0]  (!%p1025_p0), %s245_s18, 1024, %s247_s22, %s236_s23, %s912_s0, %s913_s13, %s914_s12  }
  0x30   : > { %872 = dma.done.wait (%p105_p5), [#allocation6], 128  }
  0x31   : > { %874 = vsyncadd (%p105_p5), [#allocation6], 4294967168 }
  0x32   : > { %876 = dma.done.wait (%p105_p5), [#allocation9], 256  }
  0x33   : > { %878 = vsyncadd (%p105_p5), [#allocation9], 4294967040  ;;  %s270_s19 = sand.u32 1, %s975_s5   ;;  %s272_s14 = sand.u32 1, %s897_s24  }
  0x34   : > { %s567_s16 = sshll.u32 %s272_s14, 6  ;;  %s271_s9 = scalar_lea.sflag [#allocation6], %s270_s19 }
  0x35   : > { %s1066_s17 = scalar_lea.vmem [#allocation10], %s567_s16 }
  0x36   : > { %880 = dma.done.wait (%p999_p8), %s271_s9, 1024  }
  0x37   : > { %882 = vsyncadd (%p999_p8), %s271_s9, 4294966272 }
  0x38   : > { %884 = dma.done.wait (%p105_p5), [#allocation9], 512  }
  0x39   : > { %886 = vsyncadd (%p105_p5), [#allocation9], 4294966784  ;;  %307 = sbr.rel (%p558_p9) target bundleno = 199 (0xc7), region = 64 }
  0x3e   : > { %vm308_vm0 = vcmask 7168   ;;  %v312_v1 = vld [vmem:[#allocation8 + $0x8] sm:$0xff]  ;;  %v311_v2 = vld [vmem:[#allocation8] sm:$0xff]  ;;  %v915_v3 = vmov 0.0   ;;  %v310_v4 = vld [vmem:[#allocation5] sm:$0xff]  ;;  %vm317_vm1 = vcmask 130048  }
  0x3f   : > { %309 = vst.msk [vmem:[#allocation3] sm:$0xff] %vm308_vm0, %v915_v3  ;;  %335 = vmatpush.msra.mxu0 %v312_v1  ;;  %v702_v5 = vld [vmem:[%s1110_s2] ss:$0 sm:$0xff] }
  0x41   : > { %336 = vmatpush.msra.mxu0 %v311_v2 }
  0x42   : > { %570 = vmatmul.msk.f32.vlgmr.msra.gmra.mxu0 %vm317_vm1, %v310_v4 }
  0xbf   : > { %v338_v6 = vpop.f32.mrf.mxu0 }
  0xc0   : > { %v339_v7 = vadd.f32 %v702_v5, %v338_v6 }
  0xc2   : > { %v341_v8 = vmax.f32 %v339_v7, 0.0 }
  0xc4   : > { %v342_v9 = vpack.c.bf16 %v341_v8, %v341_v8 }
  0xc6   : > { %343 = vst [vmem:[#allocation2] sm:$0xf] %v342_v9 }
  0xc7 PF: > { %v617_v10 = vld [vmem:[%s1066_s17 + $0x38] sm:$0xff]  ;;  %v616_v11 = vld [vmem:[%s1066_s17 + $0x30] sm:$0xff]  ;;  %v615_v12 = vld [vmem:[%s1066_s17 + $0x28] sm:$0xff]  ;;  %s571_s18 = sshll.u32 %s975_s5, 7  ;;  %vm449_vm2 = vcmask 7168   ;;  %p605_p5 = scmp.ne.s32.totalorder %s975_s5, 3 }
  0xc8   : > { %416 = vmatpush.bf16.msra.mxu0 %v617_v10  ;;  %v614_v13 = vld [vmem:[%s1066_s17 + $0x20] sm:$0xff]  ;;  %v613_v14 = vld [vmem:[%s1066_s17 + $0x18] sm:$0xff]  ;;  %v612_v15 = vld [vmem:[%s1066_s17 + $0x10] sm:$0xff]  ;;  %s345_s21 = sshra.s32 %s571_s18, 7 }
  0xc9   : > { %v611_v16 = vld [vmem:[%s1066_s17 + $0x8] sm:$0xff]  ;;  %v610_v17 = vld [vmem:[%s1066_s17] sm:$0xff]  ;;  %s572_s22 = sshll.u32 %s345_s21, 3 }
  0xca   : > { %s348_s23 = scalar_lea.vmem [#allocation11], %s572_s22  ;;  %v446_v38 = vld [vmem:[#allocation3] sm:$0xff] }
  0xcb   : > { %v349_v19 = vld [vmem:[%s348_s23] sm:$0xff] }
  0xcc   : > { %417 = vmatpush.bf16.msra.mxu0 %v616_v11  ;;  %v367_v20 = vperm.slane %v349_v19, 0  ;;  %v434_v23 = vperm.slane %v349_v19, 3  ;;  %v430_v24 = vperm.slane %v349_v19, 1  ;;  %v436_v26 = vperm.slane %v349_v19, 4 }
  0xcd   : > { %v350_v18 = vld [vmem:[#allocation2] sm:$0xf]  ;;  %v442_v34 = vperm.slane %v349_v19, 2 }
  0xd0   : > { %418 = vmatpush.bf16.msra.mxu0 %v615_v12 }
  0xd4   : > { %419 = vmatpush.bf16.msra.mxu0 %v614_v13 }
  0xd8   : > { %420 = vmatpush.bf16.msra.mxu0 %v613_v14 }
  0xdc   : > { %421 = vmatpush.bf16.msra.mxu0 %v612_v15 }
  0xe0   : > { %422 = vmatpush.bf16.msra.mxu0 %v611_v16 }
  0xe4   : > { %423 = vmatpush.bf16.msra.mxu0 %v610_v17 }
  0xe7   : > { %424 = vmatmul.bf16.vlgmr.msra.gmra.mxu0 %v350_v18 }
 0x164   : > { %v425_v21 = vpop.f32.mrf.mxu0 }
 0x165   : > { %v426_v22 = vadd.f32 %v425_v21, %v367_v20 }
 0x167   : > { %v429_v25 = vmax.f32 %v426_v22, 0.0 }
 0x169   : > { %v435_v27 = vsub.f32 %v429_v25, %v434_v23  ;;  %v431_v28 = vmul.f32 %v430_v24, %v429_v25 }
 0x16b   : > { %v437_v29 = vmul.f32 %v436_v26, %v435_v27  ;;  %432 = vadd.xlane.f32.xlu0 %v431_v28 }
 0x16c   : > { %v427_v30 = vpop.f32.mrf.mxu0 }
 0x16d   : > { %v438_v31 = vmul.f32 %v437_v29, %v437_v29 }
 0x16f   : > { %v439_v32 = vsub.f32 0.0, %v438_v31 }
 0x171   : > { %v440_v33 = vmul.f32 1.442695, %v439_v32 }
 0x173   : > { %703 = vpow2.f32 %v440_v33 }
 0x179   : > { %v704_v35 = vpop.eup %703 }
 0x17a   : > { %v443_v36 = vmul.f32 %v704_v35, %v442_v34 }
 0x17c   : > { %444 = vadd.xlane.f32.xlu0 %v443_v36 }
 0x1de   : > { %v433_v37 = vpop.xlane.xlu0 %432 }
 0x1ef   : > { %v445_v39 = vpop.xlane.xlu0 %444 }
 0x1f0   : > { %v447_v40 = vadd.f32 %v445_v39, %v433_v37  ;;  %454 = sbr.rel (%p605_p5) target bundleno = 626 (0x272), region = 68 }
 0x1f2   : > { %v448_v41 = vadd.f32 %v447_v40, %v446_v38 }
 0x1f4   : > { %450 = vst.msk [vmem:[#allocation3] sm:$0xff] %vm449_vm2, %v448_v41 }
 0x1f5   : > { %v706_v43 = vld [vmem:[#allocation4] ss:$0 sm:$0xff]  ;;  %v916_v44 = vmov 0  }
 0x1f6   : > { %705 = vset.pattern.permute.xlu0 %v916_v44 }
 0x1fb   : > { %v455_v42 = vld [vmem:[#allocation3] sm:$0xff] }
 0x1fc   : > { %v460_v45 = vadd.f32 %v706_v43, %v455_v42 }
 0x1fe   : > { %463 = vperm.xlu0 %705, %v460_v45  }
 0x270   : > { %v464_v46 = vpop.permute.xlu0 %463 }
 0x271   : > { %466 = vst [vmem:[#allocation12] sm:$0xff] %v464_v46 }
 0x272 PF: > { %p657_p8 = scmp.eq.s32.totalorder %s975_s5, 3  ;;  %s917_s28 = smov [#allocation12]  }
 0x273   : > { %s473_s29 = sshll.u32 %s917_s28, 4  ;;  %s475_s7 = sshll.u32 %s1114_s6, 4  ;;  %s474_s29 = int_to_ptr.vmem [resolvable:$true] %s473_s29  ;;  %s476_s7 = int_to_ptr.hbm [resolvable:$true] %s475_s7 }
 0x274   : > { %633 = dma.vmem_to_hbm [thread:$0]  (%p657_p8), %s474_s29, 128, %s476_s7, [#allocation7]  }
 0x275   : > { %888 = dma.done.wait (%p657_p8), [#allocation7], 128  }
 0x276   : > { %890 = vsyncadd (%p657_p8), [#allocation7], 4294967168 }
 0x277 PF: > { %p18_p9 = scmp.ge.s32.totalorder %s978_s27, 6   ;;  %s1122_s23 = smov %s897_s24 }
 0x278   : > { %s1123_s24 = smov %s901_s25  ;;  %s1124_s25 = smov %s988_s30 }
 0x279   : > { %s1125_s26 = smov %s978_s27  ;;  %20 = sbr.rel (!%p18_p9) target bundleno = 7 (0x7), region = 101 }
 0x27e   :  { %489 = vsyncpa [#allocation6], 1 }
 0x27f   :  { %491 = vsyncpa [#allocation6 + $0x1], 1 }
 0x280   :  { %492 = vsyncpa [#allocation9], 1 }
 0x281   :  { %493 = vsyncpa [#allocation7], 1 }
 0x282   :  { %495 = vsyncpa [#allocation7 + $0x1], 1 }

</bundles_post_ra>
